<compile_context>
chip_gen: v7x
topology: tpu7x:2x2x1
jax: 0.10.0
libtpu: 0.0.40
codegen_flags: <defaults>
</compile_context>

<pallas_src>
import functools

import jax
import jax.numpy as jnp
from jax.experimental import pallas as pl
from jax.experimental.pallas import tpu as pltpu


def _make_skipgram_kernel(block_b, K, D):
    """Builds the fused-gather skip-gram kernel for a batch tile of block_b."""
    KP1 = K + 1

    def kernel(c_idx_ref, p_idx_ref, n_idx_ref,      # scalar-prefetch (SMEM)
               emb_in_hbm, emb_out_hbm,              # tables, memory_space=ANY
               out_ref,                              # (1, K+1, TB) VMEM block
               vin_buf, vctx_buf, sems):             # scratch
        tile = pl.program_id(0)
        base = tile * block_b

        # ---- issue all row gathers for this batch tile ------------------
        @pl.loop(0, block_b)
        def _(r):
            g = base + r
            # center word -> v_in row r
            pltpu.make_async_copy(
                emb_in_hbm.at[pl.ds(c_idx_ref[g], 1)],
                vin_buf.at[pl.ds(r, 1)],
                sems.at[0]).start()
            # positive context -> context slot 0
            pltpu.make_async_copy(
                emb_out_hbm.at[pl.ds(p_idx_ref[g], 1)],
                vctx_buf.at[0, pl.ds(r, 1)],
                sems.at[1]).start()
            # K negative contexts -> context slots 1..K
            for k in range(K):
                pltpu.make_async_copy(
                    emb_out_hbm.at[pl.ds(n_idx_ref[g * K + k], 1)],
                    vctx_buf.at[1 + k, pl.ds(r, 1)],
                    sems.at[1]).start()

        # ---- drain: one matching-size wait per issued copy --------------
        # (robust under either byte-counting or per-copy semaphore
        #  semantics; for very large TB a single buffer-sized wait would
        #  amortize this).
        @pl.loop(0, block_b)
        def _(r):  # noqa: F811
            pltpu.make_async_copy(
                emb_in_hbm.at[pl.ds(0, 1)], vin_buf.at[pl.ds(0, 1)],
                sems.at[0]).wait()
            for _k in range(KP1):
                pltpu.make_async_copy(
                    emb_out_hbm.at[pl.ds(0, 1)], vctx_buf.at[0, pl.ds(0, 1)],
                    sems.at[1]).wait()

        # ---- compute: single fused reduction, lane-dense output ---------
        v_in = vin_buf[...].astype(jnp.float32)        # (TB, D)
        v_ctx = vctx_buf[...].astype(jnp.float32)      # (K+1, TB, D)
        # scores[k, b] = sum_d v_ctx[k, b, d] * v_in[b, d]   (VPU + XLU)
        out_ref[0] = jnp.sum(v_ctx * v_in[None, :, :], axis=-1)  # (K+1, TB)

    return kernel


def skipgram_forward(emb_in, emb_out, center_words, pos_context_words,
                     neg_context_words, *, block_b=None):
    """Returns (pos_scores (B,), neg_scores (B, K)) — same as the torch module."""
    V, D = emb_in.shape
    B = center_words.shape[0]
    K = neg_context_words.shape[1]
    KP1 = K + 1

    if block_b is None:
        block_b = min(B, 256)      # re-derive per TPU generation (VMEM budget)
    TB = max(1, min(block_b, B))

    num_tiles = pl.cdiv(B, TB)
    B_pad = num_tiles * TB
    pad = B_pad - B

    c = jnp.asarray(center_words, jnp.int32)
    p = jnp.asarray(pos_context_words, jnp.int32)
    n = jnp.asarray(neg_context_words, jnp.int32).reshape(-1)
    if pad:
        c = jnp.concatenate([c, jnp.zeros((pad,), jnp.int32)])
        p = jnp.concatenate([p, jnp.zeros((pad,), jnp.int32)])
        n = jnp.concatenate([n, jnp.zeros((pad * K,), jnp.int32)])

    kernel = _make_skipgram_kernel(TB, K, D)

    itemsize = jnp.dtype(emb_in.dtype).itemsize
    step_bytes = (KP1 + 1) * TB * D * itemsize + KP1 * TB * 4
    vmem_limit = int(min(max(32 << 20, 4 * step_bytes), 48 << 20))

    grid_spec = pltpu.PrefetchScalarGridSpec(
        num_scalar_prefetch=3,                     # center / pos / neg indices
        grid=(num_tiles,),
        in_specs=[
            pl.BlockSpec(memory_space=pl.ANY),     # embeddings_in  table (HBM)
            pl.BlockSpec(memory_space=pl.ANY),     # embeddings_out table (HBM)
        ],
        out_specs=pl.BlockSpec((1, KP1, TB), lambda i, c_r, p_r, n_r: (i, 0, 0)),
        scratch_shapes=[
            pltpu.VMEM((TB, D), emb_in.dtype),         # gathered v_in
            pltpu.VMEM((KP1, TB, D), emb_out.dtype),   # gathered [pos, negs]
            pltpu.SemaphoreType.DMA((2,)),             # one sem per buffer
        ],
    )

    scores_t = pl.pallas_call(
        kernel,
        grid_spec=grid_spec,
        out_shape=jax.ShapeDtypeStruct((num_tiles, KP1, TB), jnp.float32),
        compiler_params=pltpu.CompilerParams(
            dimension_semantics=("parallel",),
            vmem_limit_bytes=vmem_limit,
        ),
    )(c, p, n, emb_in, emb_out)

    # (num_tiles, K+1, TB) -> (K+1, B); split back into the public API shapes.
    scores = jnp.transpose(scores_t, (1, 0, 2)).reshape(KP1, B_pad)[:, :B]
    pos_scores = scores[0]            # (B,)
    neg_scores = scores[1:].T         # (B, K)
    return pos_scores, neg_scores


def init_params(key, vocab_size, embedding_dim):
    """Deterministic xavier_uniform init for both embedding tables."""
    k_in, k_out = jax.random.split(key)
    bound = (6.0 / (vocab_size + embedding_dim)) ** 0.5
    emb_in = jax.random.uniform(
        k_in, (vocab_size, embedding_dim), jnp.float32, -bound, bound)
    emb_out = jax.random.uniform(
        k_out, (vocab_size, embedding_dim), jnp.float32, -bound, bound)
    return emb_in, emb_out


if __name__ == "__main__":
    vocab_size = 64
    embedding_dim = 128   # lane-aligned D
    B = 16                # small demo batch; kernel tiles it with TB=8
    K = 5                 # negatives per pair

    key = jax.random.PRNGKey(0)
    k_params, k_c, k_p, k_n = jax.random.split(key, 4)

    emb_in, emb_out = init_params(k_params, vocab_size, embedding_dim)
    center_words = jax.random.randint(k_c, (B,), 0, vocab_size, jnp.int32)
    pos_context_words = jax.random.randint(k_p, (B,), 0, vocab_size, jnp.int32)
    neg_context_words = jax.random.randint(k_n, (B, K), 0, vocab_size, jnp.int32)

    fwd = jax.jit(skipgram_forward, static_argnames=("block_b",))
    pos_scores, neg_scores = fwd(emb_in, emb_out, center_words,
                                 pos_context_words, neg_context_words,
                                 block_b=8)
    jax.block_until_ready((pos_scores, neg_scores))

    # Pure-JAX reference check.
    v_in = jnp.take(emb_in, center_words, axis=0)
    v_out = jnp.take(emb_out, pos_context_words, axis=0)
    v_neg = jnp.take(emb_out, neg_context_words, axis=0)
    pos_ref = jnp.sum(v_in * v_out, axis=1)
    neg_ref = jnp.einsum("bkd,bd->bk", v_neg, v_in)

    assert pos_scores.shape == (B,)
    assert neg_scores.shape == (B, K)
    assert jnp.allclose(pos_scores, pos_ref, atol=1e-5, rtol=1e-5)
    assert jnp.allclose(neg_scores, neg_ref, atol=1e-5, rtol=1e-5)

    print("KERNEL_OK")
</pallas_src>

<mosaic_0001>
module attributes {stable_mosaic.version = 11 : i64} {
  func.func @kernel(%arg0: i32, %arg1: memref<16xi32, #tpu.memory_space<smem>>, %arg2: memref<16xi32, #tpu.memory_space<smem>>, %arg3: memref<80xi32, #tpu.memory_space<smem>>, %arg4: memref<64x128xf32, #tpu.memory_space<any>>, %arg5: memref<64x128xf32, #tpu.memory_space<any>>, %arg6: memref<1x6x8xf32, #tpu.memory_space<vmem>>, %arg7: memref<8x128xf32, #tpu.memory_space<vmem>>, %arg8: memref<6x8x128xf32, #tpu.memory_space<vmem>>, %arg9: memref<2x!tpu.dma_semaphore, #tpu.memory_space<semaphore_mem>>) attributes {dimension_semantics = [#tpu.dimension_semantics<parallel>], iteration_bounds = array<i64: 2>, scalar_prefetch = 3 : i64, scratch_operands = 3 : i64, tpu.core_type = #tpu.core_type<tc>, window_params = [{}, {}, {transform_indices = @transform_2, window_bounds = array<i64: 1, 6, 8>}]} {
    %c8_i32 = arith.constant 8 : i32
    %0 = arith.muli %arg0, %c8_i32 : i32
    %c0_i32 = arith.constant 0 : i32
    %c8_i32_0 = arith.constant 8 : i32
    %1 = arith.addi %c0_i32, %c8_i32_0 : i32
    %c1_i32 = arith.constant 1 : i32
    scf.for %arg10 = %c0_i32 to %1 step %c1_i32  : i32 {
      %c1_i32_12 = arith.constant 1 : i32
      %12 = arith.muli %arg10, %c1_i32_12 : i32
      %c0_i32_13 = arith.constant 0 : i32
      %13 = arith.addi %c0_i32_13, %12 : i32
      %14 = arith.addi %0, %13 : i32
      %15 = arith.index_cast %14 : i32 to index
      %16 = memref.load %arg1[%15] : memref<16xi32, #tpu.memory_space<smem>>
      %c0_i32_14 = arith.constant 0 : i32
      %c0_i32_15 = arith.constant 0 : i32
      %17 = tpu.memref_slice %arg4[%16, %c0_i32_15] : memref<64x128xf32, #tpu.memory_space<any>> -> memref<1x128xf32, #tpu.memory_space<any>>
      %c0_i32_16 = arith.constant 0 : i32
      %18 = tpu.memref_slice %arg7[%13, %c0_i32_16] : memref<8x128xf32, #tpu.memory_space<vmem>> -> memref<1x128xf32, #tpu.memory_space<vmem>>
      %19 = tpu.memref_slice %arg9[%c0_i32_14] : memref<2x!tpu.dma_semaphore, #tpu.memory_space<semaphore_mem>> -> memref<1x!tpu.dma_semaphore, #tpu.memory_space<semaphore_mem>>
      %20 = tpu.memref_squeeze %19 : memref<1x!tpu.dma_semaphore, #tpu.memory_space<semaphore_mem>> -> memref<!tpu.dma_semaphore, #tpu.memory_space<semaphore_mem>>
      tpu.enqueue_dma source(%17 : memref<1x128xf32, #tpu.memory_space<any>>) target(%18 : memref<1x128xf32, #tpu.memory_space<vmem>>) target_semaphore(%20 : memref<!tpu.dma_semaphore, #tpu.memory_space<semaphore_mem>>)
      %21 = arith.index_cast %14 : i32 to index
      %22 = memref.load %arg2[%21] : memref<16xi32, #tpu.memory_space<smem>>
      %c0_i32_17 = arith.constant 0 : i32
      %c1_i32_18 = arith.constant 1 : i32
      %c0_i32_19 = arith.constant 0 : i32
      %23 = tpu.memref_slice %arg5[%22, %c0_i32_19] : memref<64x128xf32, #tpu.memory_space<any>> -> memref<1x128xf32, #tpu.memory_space<any>>
      %c0_i32_20 = arith.constant 0 : i32
      %24 = tpu.memref_slice %arg8[%c0_i32_17, %13, %c0_i32_20] : memref<6x8x128xf32, #tpu.memory_space<vmem>> -> memref<1x1x128xf32, #tpu.memory_space<vmem>>
      %25 = tpu.memref_squeeze %24 : memref<1x1x128xf32, #tpu.memory_space<vmem>> -> memref<1x128xf32, #tpu.memory_space<vmem>>
      %26 = tpu.memref_slice %arg9[%c1_i32_18] : memref<2x!tpu.dma_semaphore, #tpu.memory_space<semaphore_mem>> -> memref<1x!tpu.dma_semaphore, #tpu.memory_space<semaphore_mem>>
      %27 = tpu.memref_squeeze %26 : memref<1x!tpu.dma_semaphore, #tpu.memory_space<semaphore_mem>> -> memref<!tpu.dma_semaphore, #tpu.memory_space<semaphore_mem>>
      tpu.enqueue_dma source(%23 : memref<1x128xf32, #tpu.memory_space<any>>) target(%25 : memref<1x128xf32, #tpu.memory_space<vmem>>) target_semaphore(%27 : memref<!tpu.dma_semaphore, #tpu.memory_space<semaphore_mem>>)
      %c5_i32 = arith.constant 5 : i32
      %28 = arith.muli %14, %c5_i32 : i32
      %c0_i32_21 = arith.constant 0 : i32
      %29 = arith.addi %28, %c0_i32_21 : i32
      %30 = arith.index_cast %29 : i32 to index
      %31 = memref.load %arg3[%30] : memref<80xi32, #tpu.memory_space<smem>>
      %c1_i32_22 = arith.constant 1 : i32
      %c1_i32_23 = arith.constant 1 : i32
      %c0_i32_24 = arith.constant 0 : i32
      %32 = tpu.memref_slice %arg5[%31, %c0_i32_24] : memref<64x128xf32, #tpu.memory_space<any>> -> memref<1x128xf32, #tpu.memory_space<any>>
      %c0_i32_25 = arith.constant 0 : i32
      %33 = tpu.memref_slice %arg8[%c1_i32_22, %13, %c0_i32_25] : memref<6x8x128xf32, #tpu.memory_space<vmem>> -> memref<1x1x128xf32, #tpu.memory_space<vmem>>
      %34 = tpu.memref_squeeze %33 : memref<1x1x128xf32, #tpu.memory_space<vmem>> -> memref<1x128xf32, #tpu.memory_space<vmem>>
      %35 = tpu.memref_slice %arg9[%c1_i32_23] : memref<2x!tpu.dma_semaphore, #tpu.memory_space<semaphore_mem>> -> memref<1x!tpu.dma_semaphore, #tpu.memory_space<semaphore_mem>>
      %36 = tpu.memref_squeeze %35 : memref<1x!tpu.dma_semaphore, #tpu.memory_space<semaphore_mem>> -> memref<!tpu.dma_semaphore, #tpu.memory_space<semaphore_mem>>
      tpu.enqueue_dma source(%32 : memref<1x128xf32, #tpu.memory_space<any>>) target(%34 : memref<1x128xf32, #tpu.memory_space<vmem>>) target_semaphore(%36 : memref<!tpu.dma_semaphore, #tpu.memory_space<semaphore_mem>>)
      %c5_i32_26 = arith.constant 5 : i32
      %37 = arith.muli %14, %c5_i32_26 : i32
      %c1_i32_27 = arith.constant 1 : i32
      %38 = arith.addi %37, %c1_i32_27 : i32
      %39 = arith.index_cast %38 : i32 to index
      %40 = memref.load %arg3[%39] : memref<80xi32, #tpu.memory_space<smem>>
      %c2_i32 = arith.constant 2 : i32
      %c1_i32_28 = arith.constant 1 : i32
      %c0_i32_29 = arith.constant 0 : i32
      %41 = tpu.memref_slice %arg5[%40, %c0_i32_29] : memref<64x128xf32, #tpu.memory_space<any>> -> memref<1x128xf32, #tpu.memory_space<any>>
      %c0_i32_30 = arith.constant 0 : i32
      %42 = tpu.memref_slice %arg8[%c2_i32, %13, %c0_i32_30] : memref<6x8x128xf32, #tpu.memory_space<vmem>> -> memref<1x1x128xf32, #tpu.memory_space<vmem>>
      %43 = tpu.memref_squeeze %42 : memref<1x1x128xf32, #tpu.memory_space<vmem>> -> memref<1x128xf32, #tpu.memory_space<vmem>>
      %44 = tpu.memref_slice %arg9[%c1_i32_28] : memref<2x!tpu.dma_semaphore, #tpu.memory_space<semaphore_mem>> -> memref<1x!tpu.dma_semaphore, #tpu.memory_space<semaphore_mem>>
      %45 = tpu.memref_squeeze %44 : memref<1x!tpu.dma_semaphore, #tpu.memory_space<semaphore_mem>> -> memref<!tpu.dma_semaphore, #tpu.memory_space<semaphore_mem>>
      tpu.enqueue_dma source(%41 : memref<1x128xf32, #tpu.memory_space<any>>) target(%43 : memref<1x128xf32, #tpu.memory_space<vmem>>) target_semaphore(%45 : memref<!tpu.dma_semaphore, #tpu.memory_space<semaphore_mem>>)
      %c5_i32_31 = arith.constant 5 : i32
      %46 = arith.muli %14, %c5_i32_31 : i32
      %c2_i32_32 = arith.constant 2 : i32
      %47 = arith.addi %46, %c2_i32_32 : i32
      %48 = arith.index_cast %47 : i32 to index
      %49 = memref.load %arg3[%48] : memref<80xi32, #tpu.memory_space<smem>>
      %c3_i32 = arith.constant 3 : i32
      %c1_i32_33 = arith.constant 1 : i32
      %c0_i32_34 = arith.constant 0 : i32
      %50 = tpu.memref_slice %arg5[%49, %c0_i32_34] : memref<64x128xf32, #tpu.memory_space<any>> -> memref<1x128xf32, #tpu.memory_space<any>>
      %c0_i32_35 = arith.constant 0 : i32
      %51 = tpu.memref_slice %arg8[%c3_i32, %13, %c0_i32_35] : memref<6x8x128xf32, #tpu.memory_space<vmem>> -> memref<1x1x128xf32, #tpu.memory_space<vmem>>
      %52 = tpu.memref_squeeze %51 : memref<1x1x128xf32, #tpu.memory_space<vmem>> -> memref<1x128xf32, #tpu.memory_space<vmem>>
      %53 = tpu.memref_slice %arg9[%c1_i32_33] : memref<2x!tpu.dma_semaphore, #tpu.memory_space<semaphore_mem>> -> memref<1x!tpu.dma_semaphore, #tpu.memory_space<semaphore_mem>>
      %54 = tpu.memref_squeeze %53 : memref<1x!tpu.dma_semaphore, #tpu.memory_space<semaphore_mem>> -> memref<!tpu.dma_semaphore, #tpu.memory_space<semaphore_mem>>
      tpu.enqueue_dma source(%50 : memref<1x128xf32, #tpu.memory_space<any>>) target(%52 : memref<1x128xf32, #tpu.memory_space<vmem>>) target_semaphore(%54 : memref<!tpu.dma_semaphore, #tpu.memory_space<semaphore_mem>>)
      %c5_i32_36 = arith.constant 5 : i32
      %55 = arith.muli %14, %c5_i32_36 : i32
      %c3_i32_37 = arith.constant 3 : i32
      %56 = arith.addi %55, %c3_i32_37 : i32
      %57 = arith.index_cast %56 : i32 to index
      %58 = memref.load %arg3[%57] : memref<80xi32, #tpu.memory_space<smem>>
      %c4_i32 = arith.constant 4 : i32
      %c1_i32_38 = arith.constant 1 : i32
      %c0_i32_39 = arith.constant 0 : i32
      %59 = tpu.memref_slice %arg5[%58, %c0_i32_39] : memref<64x128xf32, #tpu.memory_space<any>> -> memref<1x128xf32, #tpu.memory_space<any>>
      %c0_i32_40 = arith.constant 0 : i32
      %60 = tpu.memref_slice %arg8[%c4_i32, %13, %c0_i32_40] : memref<6x8x128xf32, #tpu.memory_space<vmem>> -> memref<1x1x128xf32, #tpu.memory_space<vmem>>
      %61 = tpu.memref_squeeze %60 : memref<1x1x128xf32, #tpu.memory_space<vmem>> -> memref<1x128xf32, #tpu.memory_space<vmem>>
      %62 = tpu.memref_slice %arg9[%c1_i32_38] : memref<2x!tpu.dma_semaphore, #tpu.memory_space<semaphore_mem>> -> memref<1x!tpu.dma_semaphore, #tpu.memory_space<semaphore_mem>>
      %63 = tpu.memref_squeeze %62 : memref<1x!tpu.dma_semaphore, #tpu.memory_space<semaphore_mem>> -> memref<!tpu.dma_semaphore, #tpu.memory_space<semaphore_mem>>
      tpu.enqueue_dma source(%59 : memref<1x128xf32, #tpu.memory_space<any>>) target(%61 : memref<1x128xf32, #tpu.memory_space<vmem>>) target_semaphore(%63 : memref<!tpu.dma_semaphore, #tpu.memory_space<semaphore_mem>>)
      %c5_i32_41 = arith.constant 5 : i32
      %64 = arith.muli %14, %c5_i32_41 : i32
      %c4_i32_42 = arith.constant 4 : i32
      %65 = arith.addi %64, %c4_i32_42 : i32
      %66 = arith.index_cast %65 : i32 to index
      %67 = memref.load %arg3[%66] : memref<80xi32, #tpu.memory_space<smem>>
      %c5_i32_43 = arith.constant 5 : i32
      %c1_i32_44 = arith.constant 1 : i32
      %c0_i32_45 = arith.constant 0 : i32
      %68 = tpu.memref_slice %arg5[%67, %c0_i32_45] : memref<64x128xf32, #tpu.memory_space<any>> -> memref<1x128xf32, #tpu.memory_space<any>>
      %c0_i32_46 = arith.constant 0 : i32
      %69 = tpu.memref_slice %arg8[%c5_i32_43, %13, %c0_i32_46] : memref<6x8x128xf32, #tpu.memory_space<vmem>> -> memref<1x1x128xf32, #tpu.memory_space<vmem>>
      %70 = tpu.memref_squeeze %69 : memref<1x1x128xf32, #tpu.memory_space<vmem>> -> memref<1x128xf32, #tpu.memory_space<vmem>>
      %71 = tpu.memref_slice %arg9[%c1_i32_44] : memref<2x!tpu.dma_semaphore, #tpu.memory_space<semaphore_mem>> -> memref<1x!tpu.dma_semaphore, #tpu.memory_space<semaphore_mem>>
      %72 = tpu.memref_squeeze %71 : memref<1x!tpu.dma_semaphore, #tpu.memory_space<semaphore_mem>> -> memref<!tpu.dma_semaphore, #tpu.memory_space<semaphore_mem>>
      tpu.enqueue_dma source(%68 : memref<1x128xf32, #tpu.memory_space<any>>) target(%70 : memref<1x128xf32, #tpu.memory_space<vmem>>) target_semaphore(%72 : memref<!tpu.dma_semaphore, #tpu.memory_space<semaphore_mem>>)
    }
    %c8_i32_1 = arith.constant 8 : i32
    %c0_i32_2 = arith.constant 0 : i32
    %c8_i32_3 = arith.constant 8 : i32
    %2 = arith.addi %c0_i32_2, %c8_i32_3 : i32
    %c1_i32_4 = arith.constant 1 : i32
    scf.for %arg10 = %c0_i32_2 to %2 step %c1_i32_4  : i32 {
      %c0_i32_12 = arith.constant 0 : i32
      %c0_i32_13 = arith.constant 0 : i32
      %c0_i32_14 = arith.constant 0 : i32
      %12 = tpu.memref_slice %arg4[%c0_i32_13, %c0_i32_14] : memref<64x128xf32, #tpu.memory_space<any>> -> memref<1x128xf32, #tpu.memory_space<any>>
      %c0_i32_15 = arith.constant 0 : i32
      %c0_i32_16 = arith.constant 0 : i32
      %13 = tpu.memref_slice %arg7[%c0_i32_15, %c0_i32_16] : memref<8x128xf32, #tpu.memory_space<vmem>> -> memref<1x128xf32, #tpu.memory_space<vmem>>
      %14 = tpu.memref_slice %arg9[%c0_i32_12] : memref<2x!tpu.dma_semaphore, #tpu.memory_space<semaphore_mem>> -> memref<1x!tpu.dma_semaphore, #tpu.memory_space<semaphore_mem>>
      %15 = tpu.memref_squeeze %14 : memref<1x!tpu.dma_semaphore, #tpu.memory_space<semaphore_mem>> -> memref<!tpu.dma_semaphore, #tpu.memory_space<semaphore_mem>>
      tpu.wait_dma2 semaphore(%15 : memref<!tpu.dma_semaphore, #tpu.memory_space<semaphore_mem>>) src(%12 : memref<1x128xf32, #tpu.memory_space<any>>) dst(%13 : memref<1x128xf32, #tpu.memory_space<vmem>>)
      %c0_i32_17 = arith.constant 0 : i32
      %c1_i32_18 = arith.constant 1 : i32
      %c0_i32_19 = arith.constant 0 : i32
      %c0_i32_20 = arith.constant 0 : i32
      %16 = tpu.memref_slice %arg5[%c0_i32_19, %c0_i32_20] : memref<64x128xf32, #tpu.memory_space<any>> -> memref<1x128xf32, #tpu.memory_space<any>>
      %c0_i32_21 = arith.constant 0 : i32
      %c0_i32_22 = arith.constant 0 : i32
      %17 = tpu.memref_slice %arg8[%c0_i32_17, %c0_i32_21, %c0_i32_22] : memref<6x8x128xf32, #tpu.memory_space<vmem>> -> memref<1x1x128xf32, #tpu.memory_space<vmem>>
      %18 = tpu.memref_squeeze %17 : memref<1x1x128xf32, #tpu.memory_space<vmem>> -> memref<1x128xf32, #tpu.memory_space<vmem>>
      %19 = tpu.memref_slice %arg9[%c1_i32_18] : memref<2x!tpu.dma_semaphore, #tpu.memory_space<semaphore_mem>> -> memref<1x!tpu.dma_semaphore, #tpu.memory_space<semaphore_mem>>
      %20 = tpu.memref_squeeze %19 : memref<1x!tpu.dma_semaphore, #tpu.memory_space<semaphore_mem>> -> memref<!tpu.dma_semaphore, #tpu.memory_space<semaphore_mem>>
      tpu.wait_dma2 semaphore(%20 : memref<!tpu.dma_semaphore, #tpu.memory_space<semaphore_mem>>) src(%16 : memref<1x128xf32, #tpu.memory_space<any>>) dst(%18 : memref<1x128xf32, #tpu.memory_space<vmem>>)
      %c0_i32_23 = arith.constant 0 : i32
      %c1_i32_24 = arith.constant 1 : i32
      %c0_i32_25 = arith.constant 0 : i32
      %c0_i32_26 = arith.constant 0 : i32
      %21 = tpu.memref_slice %arg5[%c0_i32_25, %c0_i32_26] : memref<64x128xf32, #tpu.memory_space<any>> -> memref<1x128xf32, #tpu.memory_space<any>>
      %c0_i32_27 = arith.constant 0 : i32
      %c0_i32_28 = arith.constant 0 : i32
      %22 = tpu.memref_slice %arg8[%c0_i32_23, %c0_i32_27, %c0_i32_28] : memref<6x8x128xf32, #tpu.memory_space<vmem>> -> memref<1x1x128xf32, #tpu.memory_space<vmem>>
      %23 = tpu.memref_squeeze %22 : memref<1x1x128xf32, #tpu.memory_space<vmem>> -> memref<1x128xf32, #tpu.memory_space<vmem>>
      %24 = tpu.memref_slice %arg9[%c1_i32_24] : memref<2x!tpu.dma_semaphore, #tpu.memory_space<semaphore_mem>> -> memref<1x!tpu.dma_semaphore, #tpu.memory_space<semaphore_mem>>
      %25 = tpu.memref_squeeze %24 : memref<1x!tpu.dma_semaphore, #tpu.memory_space<semaphore_mem>> -> memref<!tpu.dma_semaphore, #tpu.memory_space<semaphore_mem>>
      tpu.wait_dma2 semaphore(%25 : memref<!tpu.dma_semaphore, #tpu.memory_space<semaphore_mem>>) src(%21 : memref<1x128xf32, #tpu.memory_space<any>>) dst(%23 : memref<1x128xf32, #tpu.memory_space<vmem>>)
      %c0_i32_29 = arith.constant 0 : i32
      %c1_i32_30 = arith.constant 1 : i32
      %c0_i32_31 = arith.constant 0 : i32
      %c0_i32_32 = arith.constant 0 : i32
      %26 = tpu.memref_slice %arg5[%c0_i32_31, %c0_i32_32] : memref<64x128xf32, #tpu.memory_space<any>> -> memref<1x128xf32, #tpu.memory_space<any>>
      %c0_i32_33 = arith.constant 0 : i32
      %c0_i32_34 = arith.constant 0 : i32
      %27 = tpu.memref_slice %arg8[%c0_i32_29, %c0_i32_33, %c0_i32_34] : memref<6x8x128xf32, #tpu.memory_space<vmem>> -> memref<1x1x128xf32, #tpu.memory_space<vmem>>
      %28 = tpu.memref_squeeze %27 : memref<1x1x128xf32, #tpu.memory_space<vmem>> -> memref<1x128xf32, #tpu.memory_space<vmem>>
      %29 = tpu.memref_slice %arg9[%c1_i32_30] : memref<2x!tpu.dma_semaphore, #tpu.memory_space<semaphore_mem>> -> memref<1x!tpu.dma_semaphore, #tpu.memory_space<semaphore_mem>>
      %30 = tpu.memref_squeeze %29 : memref<1x!tpu.dma_semaphore, #tpu.memory_space<semaphore_mem>> -> memref<!tpu.dma_semaphore, #tpu.memory_space<semaphore_mem>>
      tpu.wait_dma2 semaphore(%30 : memref<!tpu.dma_semaphore, #tpu.memory_space<semaphore_mem>>) src(%26 : memref<1x128xf32, #tpu.memory_space<any>>) dst(%28 : memref<1x128xf32, #tpu.memory_space<vmem>>)
      %c0_i32_35 = arith.constant 0 : i32
      %c1_i32_36 = arith.constant 1 : i32
      %c0_i32_37 = arith.constant 0 : i32
      %c0_i32_38 = arith.constant 0 : i32
      %31 = tpu.memref_slice %arg5[%c0_i32_37, %c0_i32_38] : memref<64x128xf32, #tpu.memory_space<any>> -> memref<1x128xf32, #tpu.memory_space<any>>
      %c0_i32_39 = arith.constant 0 : i32
      %c0_i32_40 = arith.constant 0 : i32
      %32 = tpu.memref_slice %arg8[%c0_i32_35, %c0_i32_39, %c0_i32_40] : memref<6x8x128xf32, #tpu.memory_space<vmem>> -> memref<1x1x128xf32, #tpu.memory_space<vmem>>
      %33 = tpu.memref_squeeze %32 : memref<1x1x128xf32, #tpu.memory_space<vmem>> -> memref<1x128xf32, #tpu.memory_space<vmem>>
      %34 = tpu.memref_slice %arg9[%c1_i32_36] : memref<2x!tpu.dma_semaphore, #tpu.memory_space<semaphore_mem>> -> memref<1x!tpu.dma_semaphore, #tpu.memory_space<semaphore_mem>>
      %35 = tpu.memref_squeeze %34 : memref<1x!tpu.dma_semaphore, #tpu.memory_space<semaphore_mem>> -> memref<!tpu.dma_semaphore, #tpu.memory_space<semaphore_mem>>
      tpu.wait_dma2 semaphore(%35 : memref<!tpu.dma_semaphore, #tpu.memory_space<semaphore_mem>>) src(%31 : memref<1x128xf32, #tpu.memory_space<any>>) dst(%33 : memref<1x128xf32, #tpu.memory_space<vmem>>)
      %c0_i32_41 = arith.constant 0 : i32
      %c1_i32_42 = arith.constant 1 : i32
      %c0_i32_43 = arith.constant 0 : i32
      %c0_i32_44 = arith.constant 0 : i32
      %36 = tpu.memref_slice %arg5[%c0_i32_43, %c0_i32_44] : memref<64x128xf32, #tpu.memory_space<any>> -> memref<1x128xf32, #tpu.memory_space<any>>
      %c0_i32_45 = arith.constant 0 : i32
      %c0_i32_46 = arith.constant 0 : i32
      %37 = tpu.memref_slice %arg8[%c0_i32_41, %c0_i32_45, %c0_i32_46] : memref<6x8x128xf32, #tpu.memory_space<vmem>> -> memref<1x1x128xf32, #tpu.memory_space<vmem>>
      %38 = tpu.memref_squeeze %37 : memref<1x1x128xf32, #tpu.memory_space<vmem>> -> memref<1x128xf32, #tpu.memory_space<vmem>>
      %39 = tpu.memref_slice %arg9[%c1_i32_42] : memref<2x!tpu.dma_semaphore, #tpu.memory_space<semaphore_mem>> -> memref<1x!tpu.dma_semaphore, #tpu.memory_space<semaphore_mem>>
      %40 = tpu.memref_squeeze %39 : memref<1x!tpu.dma_semaphore, #tpu.memory_space<semaphore_mem>> -> memref<!tpu.dma_semaphore, #tpu.memory_space<semaphore_mem>>
      tpu.wait_dma2 semaphore(%40 : memref<!tpu.dma_semaphore, #tpu.memory_space<semaphore_mem>>) src(%36 : memref<1x128xf32, #tpu.memory_space<any>>) dst(%38 : memref<1x128xf32, #tpu.memory_space<vmem>>)
      %c0_i32_47 = arith.constant 0 : i32
      %c1_i32_48 = arith.constant 1 : i32
      %c0_i32_49 = arith.constant 0 : i32
      %c0_i32_50 = arith.constant 0 : i32
      %41 = tpu.memref_slice %arg5[%c0_i32_49, %c0_i32_50] : memref<64x128xf32, #tpu.memory_space<any>> -> memref<1x128xf32, #tpu.memory_space<any>>
      %c0_i32_51 = arith.constant 0 : i32
      %c0_i32_52 = arith.constant 0 : i32
      %42 = tpu.memref_slice %arg8[%c0_i32_47, %c0_i32_51, %c0_i32_52] : memref<6x8x128xf32, #tpu.memory_space<vmem>> -> memref<1x1x128xf32, #tpu.memory_space<vmem>>
      %43 = tpu.memref_squeeze %42 : memref<1x1x128xf32, #tpu.memory_space<vmem>> -> memref<1x128xf32, #tpu.memory_space<vmem>>
      %44 = tpu.memref_slice %arg9[%c1_i32_48] : memref<2x!tpu.dma_semaphore, #tpu.memory_space<semaphore_mem>> -> memref<1x!tpu.dma_semaphore, #tpu.memory_space<semaphore_mem>>
      %45 = tpu.memref_squeeze %44 : memref<1x!tpu.dma_semaphore, #tpu.memory_space<semaphore_mem>> -> memref<!tpu.dma_semaphore, #tpu.memory_space<semaphore_mem>>
      tpu.wait_dma2 semaphore(%45 : memref<!tpu.dma_semaphore, #tpu.memory_space<semaphore_mem>>) src(%41 : memref<1x128xf32, #tpu.memory_space<any>>) dst(%43 : memref<1x128xf32, #tpu.memory_space<vmem>>)
    }
    %c0 = arith.constant 0 : index
    %c0_5 = arith.constant 0 : index
    %3 = vector.load %arg7[%c0, %c0_5] : memref<8x128xf32, #tpu.memory_space<vmem>>, vector<8x128xf32>
    %c0_6 = arith.constant 0 : index
    %c0_7 = arith.constant 0 : index
    %c0_8 = arith.constant 0 : index
    %4 = vector.load %arg8[%c0_6, %c0_7, %c0_8] : memref<6x8x128xf32, #tpu.memory_space<vmem>>, vector<6x8x128xf32>
    %5 = vector.shape_cast %3 : vector<8x128xf32> to vector<1x8x128xf32>
    %6 = vector.broadcast %5 : vector<1x8x128xf32> to vector<6x8x128xf32>
    %7 = arith.mulf %4, %6 : vector<6x8x128xf32>
    %cst = arith.constant dense<0.000000e+00> : vector<6x8xf32>
    %8 = vector.multi_reduction <add>, %7, %cst [2] : vector<6x8x128xf32> to vector<6x8xf32>
    %c0_9 = arith.constant 0 : index
    %c0_10 = arith.constant 0 : index
    %c0_11 = arith.constant 0 : index
    %9 = vector.load %arg6[%c0_9, %c0_10, %c0_11] : memref<1x6x8xf32, #tpu.memory_space<vmem>>, vector<1x6x8xf32>
    %10 = vector.shape_cast %9 : vector<1x6x8xf32> to vector<6x8xf32>
    %11 = vector.shape_cast %8 : vector<6x8xf32> to vector<1x6x8xf32>
    tpu.vector_store %arg6[%c0_9, %c0_10, %c0_11], %11 {strides = array<i32>} : memref<1x6x8xf32, #tpu.memory_space<vmem>>, vector<1x6x8xf32>,
    return
  }
  func.func @transform_2(%arg0: i32, %arg1: memref<16xi32, #tpu.memory_space<smem>>, %arg2: memref<16xi32, #tpu.memory_space<smem>>, %arg3: memref<80xi32, #tpu.memory_space<smem>>) -> (i32, i32, i32) {
    %c0_i32 = arith.constant 0 : i32
    %c0_i32_0 = arith.constant 0 : i32
    %c0_i32_1 = arith.constant 0 : i32
    return %arg0, %c0_i32, %c0_i32_0 : i32, i32, i32
  }
}

</mosaic_0001>

<bundles_post_ra>
// kernel: squeeze.1
= control target key start
LH: loop header
LB: loop body
LE: loop exit
PB: predicated region body
PF: predicated region fallthrough
CT: control target
= control target key end

     0   :  { %s85_s0 = inlined_call_operand.vmem [shape: f32[2,8], index: 0, kind: input, shape index: {}]   ;;  %s86_s1 = inlined_call_operand.hbm [shape: f32[16], index: 1, kind: output, shape index: {}]  }
   0x1   :  { %v5_v0 = vld [vmem:[%s85_s0] sm:$0x3] }
   0x2   :  { %6 = vst [vmem:[#allocation3] sm:$0x3] %v5_v0 }
   0x3   :  { %2 = vsyncpa [#allocation1], 0  ;;  %vm8_vm0 = vcmask 64512   ;;  %s58_s0 = smov 8   ;;  %vm14_vm1 = vcmask 130112   ;;  %s59_s8 = smov [#allocation0]  }
   0x4   :  { %s26_s9 = sshll.u32 %s59_s8, 4  ;;  %s27_s9 = int_to_ptr.vmem [resolvable:$true] %s26_s9 }
   0x5   :  { %s34_s10 = scalar_lea.vmem %s27_s9, 16  ;;  %s38_s11 = scalar_lea.vmem %s27_s9, 32 }
   0x6   :  { %p35_p0 = scmp.ne.s32.totalorder %s27_s9, %s34_s10  ;;  %p39_p1 = scmp.lt.s32.totalorder %s27_s9, %s27_s9 }
   0x7   :  { %p40_p2 = scmp.lt.s32.totalorder %s38_s11, %s34_s10 }
   0x9   :  { %v11_v1 = vld [vmem:[#allocation3 + $0x1] sm:$0x1]   ;;  %v7_v2 = vld [vmem:[#allocation3] sm:$0x1]   ;;  %p41_p3 = por %p40_p2, %p39_p1 }
   0xa   :  { %12 = vrot.lane.b32.xlu0 %v11_v1, %s58_s0  ;;  %9 = vst.msk [vmem:[#allocation2] sm:$0x1] %vm8_vm0, %v7_v2  }
   0xb   :  { %p42_p4 = pnand %p41_p3, %p35_p0 }
  0x7c   :  { %v13_v3 = vpop.permute.xlu0 %12  }
  0x7d   :  { %15 = vst.msk [vmem:[#allocation2] sm:$0x1] %vm14_vm1, %v13_v3  }
  0x84   :  { %v19_v4 = vld [vmem:[#allocation2] sm:$0x1] }
  0x85   :  { %21 = vst [vmem:[#allocation0] sm:$0x1] %v19_v4 }
  0x86   :  { %45 = shalt.err (!%p42_p4)
}
  0x87   :  { %s46_s14 = scalar_lea.hbm %s86_s1, 16 }
  0x88   :  { %p47_p5 = scmp.ne.s32.totalorder %s86_s1, %s46_s14  ;;  %p50_p6 = scmp.lt.u32.totalorder %s46_s14, %s86_s1 }
  0x8a   :  { %p52_p7 = pnand %p50_p6, %p47_p5 }
  0x8c   :  { %55 = shalt.err (!%p52_p7)
}
  0x8d   :  { %29 = dma.vmem_to_hbm [thread:$0]  %s27_s9, 16, %s86_s1, [#allocation1]  }
  0x8e   :  { %56 = dma.done.wait [#allocation1], 16  }
  0x8f   :  { %57 = vsyncadd [#allocation1], 4294967280 }
  0x90   :  { %31 = vsyncpa [#allocation1], 1 }

// kernel: skipgram_forward.1
= control target key start
LH: loop header
LB: loop body
LE: loop exit
PB: predicated region body
PF: predicated region fallthrough
CT: control target
= control target key end

     0   :  { %s852_s0 = inlined_call_operand.vmem [shape: s32[16], index: 0, kind: input, shape index: {}]   ;;  %s853_s3 = inlined_call_operand.hbm [shape: f32[64,128], index: 3, kind: input, shape index: {}]   ;;  %s854_s4 = inlined_call_operand.hbm [shape: f32[64,128], index: 4, kind: input, shape index: {}]   ;;  %s855_s5 = inlined_call_operand.vmem [shape: f32[2,6,8], index: 5, kind: output, shape index: {}]   ;;  %s856_s1 = inlined_call_operand.vmem [shape: s32[16], index: 1, kind: input, shape index: {}]   ;;  %s857_s2 = inlined_call_operand.vmem [shape: s32[80], index: 2, kind: input, shape index: {}]  }
   0x1   :  { %s10_s20 = sshll.u32 %s852_s0, 4  ;;  %s14_s23 = sshll.u32 %s856_s1, 4  ;;  %s11_s20 = int_to_ptr.vmem [resolvable:$true] %s10_s20  ;;  %s15_s23 = int_to_ptr.vmem [resolvable:$true] %s14_s23 }
   0x2   :  { %s410_s24 = scalar_lea.vmem %s11_s20, 16  ;;  %p415_p1 = scmp.lt.s32.totalorder %s11_s20, %s11_s20 }
   0x3   :  { %p411_p0 = scmp.ne.s32.totalorder %s11_s20, %s410_s24  ;;  %p416_p2 = scmp.lt.s32.totalorder %s410_s24, %s410_s24 }
   0x5   :  { %p417_p3 = por %p416_p2, %p415_p1 }
   0x7   :  { %p418_p4 = pnand %p417_p3, %p411_p0 }
   0x9   :  { %421 = shalt.err (!%p418_p4)  }
   0xa   :  { %s644_s25 = smov [#allocation6]   ;;  %s422_s26 = scalar_lea.vmem %s15_s23, 16 }
   0xb   :  { %13 = dma.vmem_to_smem %s11_s20, 16, %s644_s25, [#allocation5] }
   0xc   :  { %p423_p5 = scmp.ne.s32.totalorder %s15_s23, %s422_s26  ;;  %p427_p6 = scmp.lt.s32.totalorder %s15_s23, %s15_s23 }
   0xd   :  { %p428_p7 = scmp.lt.s32.totalorder %s422_s26, %s422_s26 }
   0xf   :  { %p429_p8 = por %p428_p7, %p427_p6 }
  0x11   :  { %p430_p9 = pnand %p429_p8, %p423_p5 }
  0x13   :  { %433 = shalt.err (!%p430_p9)  }
  0x14   :  { %s645_s0 = smov [#allocation7]   ;;  %s18_s28 = sshll.u32 %s857_s2, 4  ;;  %s19_s28 = int_to_ptr.vmem [resolvable:$true] %s18_s28 }
  0x15   :  { %17 = dma.vmem_to_smem %s15_s23, 16, %s645_s0, [#allocation5] }
  0x16   :  { %s434_s29 = scalar_lea.vmem %s19_s28, 16  ;;  %p439_p11 = scmp.lt.s32.totalorder %s19_s28, %s19_s28 }
  0x17   :  { %p435_p10 = scmp.ne.s32.totalorder %s19_s28, %s434_s29  ;;  %p440_p12 = scmp.lt.s32.totalorder %s434_s29, %s434_s29 }
  0x19   :  { %p441_p13 = por %p440_p12, %p439_p11 }
  0x1b   :  { %p442_p0 = pnand %p441_p13, %p435_p10 }
  0x1d   :  { %445 = shalt.err (!%p442_p0)  }
  0x1e   :  { %s646_s30 = smov [#allocation8]  }
  0x1f   :  { %21 = dma.vmem_to_smem %s19_s28, 16, %s646_s30, [#allocation5] }
  0x20   :  { %626 = dma.done.wait [#allocation5], 48 }
  0x21   :  { %627 = vsyncadd [#allocation5], 4294967248 }
  0x22   :  { %23 = sfence }
  0x23   :  { %s688_s6 = smov 0  }
  0x24 LB: > { %p369_p1 = scmp.ge.s32.totalorder %s634_s6, 2  ;;  %s634_s6 = sphi %s688_s6, %s29_s6  }
  0x25   : > { %p61_p2 = scmp.lt.s32.totalorder (!%p369_p1), %s634_s6, 1  ;;  %s371_s2 = sshll.u32 (!%p369_p1), %s634_s6, 3 }
  0x26   : > { %54 = sbr.rel (%p369_p1) target bundleno = 385 (0x181), region = 12  ;;  %s702_s12 = smov (!%p369_p1), 0  }
  0x2d   : > { %s62_s7 = scalar_select %p61_p2, %s634_s6, 1 }
  0x2f   : > { %s370_s8 = sshll.u32 %s62_s7, 3 }
  0x30   : > { %s700_s11 = scalar_lea.vmem %s855_s5, %s370_s8 }
  0x31 LB: >> { %s72_s13 = sadd.s32 %s638_s12, %s371_s2  ;;  %s76_s15 = scalar_lea.vmem [#allocation2], %s638_s12  ;;  %s638_s12 = sphi %s702_s12, %s71_s12  }
  0x32   : >> { %s73_s14 = sld [smem:[#allocation6 + %s72_s13]]  ;;  %s84_s16 = sshll.u32 %s76_s15, 4  ;;  %s711_s16 = int_to_ptr.vmem [resolvable:$true] %s84_s16 }
  0x33   : >> { %s713_s17 = smul.u32 5, %s72_s13  ;;  %s715_s18 = sld [smem:[#allocation7 + %s72_s13]] }
  0x34   : >> { %s718_s19 = scalar_lea.vmem [#allocation3], %s638_s12  ;;  %s448_s7 = scalar_lea.hbm %s853_s3, 1024 }
  0x35   : >> { %s100_s20 = sshll.u32 %s718_s19, 4  ;;  %s326_s21 = scalar_lea.vmem %s718_s19, 8 [#allocation3]  ;;  %s722_s20 = int_to_ptr.vmem [resolvable:$true] %s100_s20 }
  0x36   : >> { %s725_s22 = sld [smem:[#allocation8 + %s713_s17]]  ;;  %s117_s23 = sshll.u32 %s326_s21, 4  ;;  %s728_s23 = int_to_ptr.vmem [resolvable:$true] %s117_s23 }
  0x37   : >> { %s121_s24 = sadd.s32 1, %s713_s17 }
  0x38   : >> { %s372_s25 = sshll.u32 %s73_s14, 4  ;;  %s733_s27 = sld [smem:[#allocation8 + %s121_s24]] }
  0x39   : >> { %s75_s1 = scalar_lea.hbm %s853_s3, %s372_s25 }
  0x3a   : >> { %s446_s28 = scalar_lea.hbm %s75_s1, 16  ;;  %p449_p4 = scmp.lt.u32.totalorder %s75_s1, %s853_s3 }
  0x3b   : >> { %p447_p3 = scmp.ne.s32.totalorder %s75_s1, %s446_s28  ;;  %p450_p5 = scmp.lt.u32.totalorder %s448_s7, %s446_s28 }
  0x3c   : >> { %p452_p7 = scmp.lt.u32.totalorder %s446_s28, %s75_s1 }
  0x3d   : >> { %p451_p6 = por %p450_p5, %p449_p4 }
  0x3f   : >> { %p453_p8 = por %p452_p7, %p451_p6 }
  0x41   : >> { %p454_p9 = pnand %p453_p8, %p447_p3 }
  0x43   : >> { %457 = shalt.err (!%p454_p9)  }
  0x44   : >> { %s458_s10 = scalar_lea.vmem %s711_s16, 16  ;;  %s647_s13 = smov [#allocation2]  }
  0x45   : >> { %p459_p10 = scmp.ne.s32.totalorder %s711_s16, %s458_s10  ;;  %s460_s14 = sshll.u32 %s647_s13, 4  ;;  %s461_s14 = int_to_ptr.vmem [resolvable:$false] %s460_s14 }
  0x46   : >> { %s462_s15 = scalar_lea.vmem %s461_s14, 128  ;;  %p463_p11 = scmp.lt.s32.totalorder %s711_s16, %s461_s14 }
  0x47   : >> { %p464_p12 = scmp.lt.s32.totalorder %s462_s15, %s458_s10 }
  0x49   : >> { %p465_p13 = por %p464_p12, %p463_p11 }
  0x4b   : >> { %p466_p0 = pnand %p465_p13, %p459_p10 }
  0x4d   : >> { %469 = shalt.err (!%p466_p0)  }
  0x4e   : >> { %87 = dma.hbm_to_vmem [thread:$0]  %s75_s1, 16, %s711_s16, [#allocation4] }
  0x4f   : >> { %s373_s21 = sshll.u32 %s715_s18, 4  ;;  %s330_s24 = scalar_lea.vmem %s718_s19, 16 [#allocation3] }
  0x50   : >> { %s90_s0 = scalar_lea.hbm %s854_s4, %s373_s21  ;;  %s374_s28 = sshll.u32 %s725_s22, 4 }
  0x51   : >> { %s470_s29 = scalar_lea.hbm %s90_s0, 16  ;;  %s754_s8 = scalar_lea.hbm %s854_s4, 1024 }
  0x52   : >> { %p471_p1 = scmp.ne.s32.totalorder %s90_s0, %s470_s29  ;;  %p473_p2 = scmp.lt.u32.totalorder %s90_s0, %s854_s4 }
  0x53   : >> { %p474_p3 = scmp.lt.u32.totalorder %s754_s8, %s470_s29  ;;  %p476_p5 = scmp.lt.u32.totalorder %s470_s29, %s90_s0 }
  0x55   : >> { %p475_p4 = por %p474_p3, %p473_p2 }
  0x57   : >> { %p477_p6 = por %p476_p5, %p475_p4 }
  0x59   : >> { %p478_p7 = pnand %p477_p6, %p471_p1 }
  0x5b   : >> { %481 = shalt.err (!%p478_p7)  }
  0x5c   : >> { %s482_s16 = scalar_lea.vmem %s722_s20, 16  ;;  %s648_s18 = smov [#allocation3]  }
  0x5d   : >> { %p483_p8 = scmp.ne.s32.totalorder %s722_s20, %s482_s16  ;;  %s484_s22 = sshll.u32 %s648_s18, 4  ;;  %s762_s22 = int_to_ptr.vmem [resolvable:$false] %s484_s22 }
  0x5e   : >> { %s765_s1 = scalar_lea.vmem %s762_s22, 768  ;;  %p487_p9 = scmp.lt.s32.totalorder %s722_s20, %s762_s22 }
  0x5f   : >> { %p488_p10 = scmp.lt.s32.totalorder %s765_s1, %s482_s16 }
  0x61   : >> { %p489_p11 = por %p488_p10, %p487_p9 }
  0x63   : >> { %p490_p12 = pnand %p489_p11, %p483_p8 }
  0x65   : >> { %493 = shalt.err (!%p490_p12)  }
  0x66   : >> { %103 = dma.hbm_to_vmem [thread:$0]  %s90_s0, 16, %s722_s20, [#allocation4 + $0x1] }
  0x67   : >> { %s107_s15 = scalar_lea.hbm %s854_s4, %s374_s28  ;;  %s134_s21 = sshll.u32 %s330_s24, 4  ;;  %s135_s21 = int_to_ptr.vmem [resolvable:$true] %s134_s21 }
  0x68   : >> { %s494_s25 = scalar_lea.hbm %s107_s15, 16  ;;  %p497_p0 = scmp.lt.u32.totalorder %s107_s15, %s854_s4 }
  0x69   : >> { %p495_p13 = scmp.ne.s32.totalorder %s107_s15, %s494_s25  ;;  %p498_p1 = scmp.lt.u32.totalorder %s754_s8, %s494_s25 }
  0x6a   : >> { %p500_p3 = scmp.lt.u32.totalorder %s494_s25, %s107_s15 }
  0x6b   : >> { %p499_p2 = por %p498_p1, %p497_p0 }
  0x6d   : >> { %p501_p4 = por %p500_p3, %p499_p2 }
  0x6f   : >> { %p502_p5 = pnand %p501_p4, %p495_p13 }
  0x71   : >> { %505 = shalt.err (!%p502_p5)  }
  0x72   : >> { %s506_s20 = scalar_lea.vmem %s728_s23, 16  ;;  %p511_p7 = scmp.lt.s32.totalorder %s728_s23, %s762_s22 }
  0x73   : >> { %p507_p6 = scmp.ne.s32.totalorder %s728_s23, %s506_s20  ;;  %p512_p8 = scmp.lt.s32.totalorder %s765_s1, %s506_s20 }
  0x75   : >> { %p513_p9 = por %p512_p8, %p511_p7 }
  0x77   : >> { %p514_p10 = pnand %p513_p9, %p507_p6 }
  0x79   : >> { %517 = shalt.err (!%p514_p10)  }
  0x7a   : >> { %120 = dma.hbm_to_vmem [thread:$0]  %s107_s15, 16, %s728_s23, [#allocation4 + $0x1] }
  0x7b   : >> { %s375_s24 = sshll.u32 %s733_s27, 4  ;;  %s138_s7 = sadd.s32 2, %s713_s17 }
  0x7c   : >> { %s124_s30 = scalar_lea.hbm %s854_s4, %s375_s24 }
  0x7d   : >> { %s518_s9 = scalar_lea.hbm %s124_s30, 16  ;;  %p521_p12 = scmp.lt.u32.totalorder %s124_s30, %s854_s4 }
  0x7e   : >> { %p519_p11 = scmp.ne.s32.totalorder %s124_s30, %s518_s9  ;;  %p522_p13 = scmp.lt.u32.totalorder %s754_s8, %s518_s9 }
  0x7f   : >> { %p524_p1 = scmp.lt.u32.totalorder %s518_s9, %s124_s30 }
  0x80   : >> { %p523_p0 = por %p522_p13, %p521_p12 }
  0x82   : >> { %p525_p2 = por %p524_p1, %p523_p0 }
  0x84   : >> { %p526_p3 = pnand %p525_p2, %p519_p11 }
  0x86   : >> { %529 = shalt.err (!%p526_p3)  }
  0x87   : >> { %s530_s23 = scalar_lea.vmem %s135_s21, 16  ;;  %p535_p5 = scmp.lt.s32.totalorder %s135_s21, %s762_s22 }
  0x88   : >> { %p531_p4 = scmp.ne.s32.totalorder %s135_s21, %s530_s23  ;;  %p536_p6 = scmp.lt.s32.totalorder %s765_s1, %s530_s23 }
  0x8a   : >> { %p537_p7 = por %p536_p6, %p535_p5 }
  0x8c   : >> { %p538_p8 = pnand %p537_p7, %p531_p4 }
  0x8e   : >> { %541 = shalt.err (!%p538_p8)  }
  0x8f   : >> { %137 = dma.hbm_to_vmem [thread:$0]  %s124_s30, 16, %s135_s21, [#allocation4 + $0x1] }
  0x90   : >> { %s139_s27 = sld [smem:[#allocation8 + %s138_s7]]  ;;  %s334_s18 = scalar_lea.vmem %s718_s19, 24 [#allocation3] }
  0x91   : >> { %s155_s13 = sadd.s32 3, %s713_s17  ;;  %s151_s14 = sshll.u32 %s334_s18, 4  ;;  %s152_s14 = int_to_ptr.vmem [resolvable:$true] %s151_s14 }
  0x92   : >> { %s797_s15 = sld [smem:[#allocation8 + %s155_s13]]  ;;  %s338_s25 = scalar_lea.vmem %s718_s19, 32 [#allocation3] }
  0x93   : >> { %s172_s26 = sadd.s32 4, %s713_s17  ;;  %s168_s29 = sshll.u32 %s338_s25, 4  ;;  %s807_s29 = int_to_ptr.vmem [resolvable:$true] %s168_s29 }
  0x94   : >> { %s801_s20 = sld [smem:[#allocation8 + %s172_s26]]  ;;  %s342_s24 = scalar_lea.vmem %s718_s19, 40 [#allocation3] }
  0x95   : >> { %s185_s0 = sshll.u32 %s342_s24, 4  ;;  %s816_s0 = int_to_ptr.vmem [resolvable:$true] %s185_s0 }
  0x96   : >> { %s376_s21 = sshll.u32 %s139_s27, 4 }
  0x97   : >> { %s141_s9 = scalar_lea.hbm %s854_s4, %s376_s21 }
  0x98   : >> { %s542_s7 = scalar_lea.hbm %s141_s9, 16  ;;  %p545_p10 = scmp.lt.u32.totalorder %s141_s9, %s854_s4 }
  0x99   : >> { %p543_p9 = scmp.ne.s32.totalorder %s141_s9, %s542_s7  ;;  %p546_p11 = scmp.lt.u32.totalorder %s754_s8, %s542_s7 }
  0x9a   : >> { %p548_p13 = scmp.lt.u32.totalorder %s542_s7, %s141_s9 }
  0x9b   : >> { %p547_p12 = por %p546_p11, %p545_p10 }
  0x9d   : >> { %p549_p0 = por %p548_p13, %p547_p12 }
  0x9f   : >> { %p550_p1 = pnand %p549_p0, %p543_p9 }
  0xa1   : >> { %553 = shalt.err (!%p550_p1)  }
  0xa2   : >> { %s554_s17 = scalar_lea.vmem %s152_s14, 16  ;;  %p559_p3 = scmp.lt.s32.totalorder %s152_s14, %s762_s22 }
  0xa3   : >> { %p555_p2 = scmp.ne.s32.totalorder %s152_s14, %s554_s17  ;;  %p560_p4 = scmp.lt.s32.totalorder %s765_s1, %s554_s17 }
  0xa5   : >> { %p561_p5 = por %p560_p4, %p559_p3 }
  0xa7   : >> { %p562_p6 = pnand %p561_p5, %p555_p2 }
  0xa9   : >> { %565 = shalt.err (!%p562_p6)  }
  0xaa   : >> { %154 = dma.hbm_to_vmem [thread:$0]  %s141_s9, 16, %s152_s14, [#allocation4 + $0x1] }
  0xab   : >> { %s377_s19 = sshll.u32 %s797_s15, 4  ;;  %s378_s13 = sshll.u32 %s801_s20, 4 }
  0xac   : >> { %s158_s18 = scalar_lea.hbm %s854_s4, %s377_s19 }
  0xad   : >> { %s566_s25 = scalar_lea.hbm %s158_s18, 16  ;;  %p569_p8 = scmp.lt.u32.totalorder %s158_s18, %s854_s4 }
  0xae   : >> { %p567_p7 = scmp.ne.s32.totalorder %s158_s18, %s566_s25  ;;  %p570_p9 = scmp.lt.u32.totalorder %s754_s8, %s566_s25 }
  0xaf   : >> { %p572_p11 = scmp.lt.u32.totalorder %s566_s25, %s158_s18 }
  0xb0   : >> { %p571_p10 = por %p570_p9, %p569_p8 }
  0xb2   : >> { %p573_p12 = por %p572_p11, %p571_p10 }
  0xb4   : >> { %p574_p13 = pnand %p573_p12, %p567_p7 }
  0xb6   : >> { %577 = shalt.err (!%p574_p13)  }
  0xb7   : >> { %s578_s14 = scalar_lea.vmem %s807_s29, 16  ;;  %p583_p1 = scmp.lt.s32.totalorder %s807_s29, %s762_s22 }
  0xb8   : >> { %p579_p0 = scmp.ne.s32.totalorder %s807_s29, %s578_s14  ;;  %p584_p2 = scmp.lt.s32.totalorder %s765_s1, %s578_s14 }
  0xba   : >> { %p585_p3 = por %p584_p2, %p583_p1 }
  0xbc   : >> { %p586_p4 = pnand %p585_p3, %p579_p0 }
  0xbe   : >> { %589 = shalt.err (!%p586_p4)  }
  0xbf   : >> { %171 = dma.hbm_to_vmem [thread:$0]  %s158_s18, 16, %s807_s29, [#allocation4 + $0x1] }
  0xc0   : >> { %s175_s21 = scalar_lea.hbm %s854_s4, %s378_s13 }
  0xc1   : >> { %s590_s28 = scalar_lea.hbm %s175_s21, 16  ;;  %p593_p6 = scmp.lt.u32.totalorder %s175_s21, %s854_s4 }
  0xc2   : >> { %p591_p5 = scmp.ne.s32.totalorder %s175_s21, %s590_s28  ;;  %p594_p7 = scmp.lt.u32.totalorder %s754_s8, %s590_s28 }
  0xc3   : >> { %p596_p9 = scmp.lt.u32.totalorder %s590_s28, %s175_s21 }
  0xc4   : >> { %p595_p8 = por %p594_p7, %p593_p6 }
  0xc6   : >> { %p597_p10 = por %p596_p9, %p595_p8 }
  0xc8   : >> { %p598_p11 = pnand %p597_p10, %p591_p5 }
  0xca   : >> { %601 = shalt.err (!%p598_p11)  }
  0xcb   : >> { %s602_s29 = scalar_lea.vmem %s816_s0, 16  ;;  %p607_p13 = scmp.lt.s32.totalorder %s816_s0, %s762_s22 }
  0xcc   : >> { %p603_p12 = scmp.ne.s32.totalorder %s816_s0, %s602_s29  ;;  %p608_p0 = scmp.lt.s32.totalorder %s765_s1, %s602_s29 }
  0xce   : >> { %p609_p1 = por %p608_p0, %p607_p13 }
  0xd0   : >> { %p610_p2 = pnand %p609_p1, %p603_p12 }
  0xd2   : >> { %613 = shalt.err (!%p610_p2)  }
  0xd3   : >> { %188 = dma.hbm_to_vmem [thread:$0]  %s175_s21, 16, %s816_s0, [#allocation4 + $0x1] }
  0xd4   : >> { %s71_s12 = sadd.s32 1, %s638_s12  }
  0xd5   : >> { %p68_p3 = scmp.ge.s32.totalorder %s71_s12, 8  }
  0xd6   : > { %s640_s8 = smov (%p68_p3), 0  }
  0xd7   : > { %70 = sbr.rel (!%p68_p3) target bundleno = 49 (0x31), region = 98 }
  0xde LB: >> { %628 = dma.done.wait [#allocation4], 16  ;;  %s642_s8 = sphi %s640_s8, %s194_s8  }
  0xdf   : >> { %629 = vsyncadd [#allocation4], 4294967280 }
  0xe0   : >> { %630 = dma.done.wait [#allocation4 + $0x1], 96 }
  0xe1   : >> { %631 = vsyncadd [#allocation4 + $0x1], 4294967200  ;;  %s194_s8 = sadd.s32 1, %s642_s8  }
  0xe2   : >> { %p191_p4 = scmp.ge.s32.totalorder %s194_s8, 8  }
  0xe3   : > { %v211_v0 = vld [vmem:[#allocation2] sm:$0xff] (%p191_p4)  ;;  %v212_v1 = vld [vmem:[#allocation3] sm:$0xff] (%p191_p4)  ;;  %v214_v2 = vld [vmem:[#allocation3 + $0x10] sm:$0xff] (%p191_p4)  ;;  %v242_v13 = vlaneseq (%p191_p4)  ;;  %vm268_vm0 = vcmask (%p191_p4), 1041409   ;;  %vm270_vm1 = vcmask (%p191_p4), 1042434   ;;  %vm272_vm2 = vcmask (%p191_p4), 1043459  }
  0xe4   : > { %193 = sbr.rel (!%p191_p4) target bundleno = 222 (0xde), region = 109  ;;  %v218_v3 = vmul.f32 (%p191_p4), %v212_v1, %v211_v0  ;;  %v220_v4 = vmul.f32 (%p191_p4), %v214_v2, %v211_v0  ;;  %v213_v5 = vld [vmem:[#allocation3 + $0x8] sm:$0xff] (%p191_p4)  ;;  %v215_v6 = vld [vmem:[#allocation3 + $0x18] sm:$0xff] (%p191_p4)  ;;  %v216_v9 = vld [vmem:[#allocation3 + $0x20] sm:$0xff] (%p191_p4)  ;;  %vm274_vm3 = vcmask (%p191_p4), 1044484   ;;  %vm276_vm4 = vcmask (%p191_p4), 1045509  }
  0xe5   : > { %v219_v7 = vmul.f32 (%p191_p4), %v213_v5, %v211_v0  ;;  %v221_v8 = vmul.f32 (%p191_p4), %v215_v6, %v211_v0  ;;  %v217_v10 = vld [vmem:[#allocation3 + $0x28] sm:$0xff] (%p191_p4)  ;;  %v222_v11 = vmul.f32 (%p191_p4), %v216_v9, %v211_v0  ;;  %v243_v14 = vand.u32 (%p191_p4), 127, %v242_v13 }
  0xe6   : > { %224 = vadd.xlane.f32.xlu0 (%p191_p4), %v218_v3  ;;  %228 = vadd.xlane.f32.xlu1 (%p191_p4), %v220_v4  ;;  %v223_v12 = vmul.f32 (%p191_p4), %v217_v10, %v211_v0  ;;  %v245_v15 = vshrl.u32 (%p191_p4), %v242_v13, 7  ;;  %vm279_vm5 = vcmask (%p191_p4), 62464  }
  0xe8   : > { %v246_v18 = vsub.s32 (%p191_p4), %v243_v14, %v245_v15 }
  0xea   : > { %226 = vadd.xlane.f32.xlu0 (%p191_p4), %v219_v7  ;;  %230 = vadd.xlane.f32.xlu1 (%p191_p4), %v221_v8 }
  0xee   : > { %232 = vadd.xlane.f32.xlu0 %v222_v11  ;;  %234 = vadd.xlane.f32.xlu1 %v223_v12 }
 0x173   : > { %v225_v16 = vpop.xlane.xlu0 %224  ;;  %v229_v17 = vpop.xlane.xlu1 %228 }
 0x174   : > { %v247_v21 = vrot.slane %v225_v16, %v246_v18  ;;  %v255_v24 = vrot.slane %v229_v17, %v246_v18 }
 0x177   : > { %v227_v19 = vpop.xlane.xlu0 %226  ;;  %v231_v20 = vpop.xlane.xlu1 %230 }
 0x178   : > { %v251_v22 = vrot.slane %v227_v19, %v246_v18  ;;  %v259_v23 = vrot.slane %v231_v20, %v246_v18 }
 0x17a   : > { %v269_v25 = vsel %vm268_vm0, %v251_v22, %v247_v21 }
 0x17b   : > { %v271_v26 = vsel %vm270_vm1, %v255_v24, %v269_v25  ;;  %v233_v27 = vpop.xlane.xlu0 %232  ;;  %v235_v28 = vpop.xlane.xlu1 %234 }
 0x17c   : > { %v273_v29 = vsel %vm272_vm2, %v259_v23, %v271_v26  ;;  %v263_v30 = vrot.slane %v233_v27, %v246_v18  ;;  %v267_v31 = vrot.slane %v235_v28, %v246_v18 }
 0x17e   : > { %v275_v32 = vsel %vm274_vm3, %v263_v30, %v273_v29 }
 0x17f   : > { %v277_v33 = vsel %vm276_vm4, %v267_v31, %v275_v32 }
 0x180   : > { %280 = vst.msk [vmem:[%s700_s11] sm:$0x3f] %vm279_vm5, %v277_v33 }
 0x181 PF: > { %s29_s6 = sadd.s32 1, %s634_s6  }
 0x182   : > { %p26_p5 = scmp.ge.s32.totalorder %s29_s6, 3  }
 0x184   :  { %28 = sbr.rel (!%p26_p5) target bundleno = 36 (0x24), region = 120 }
 0x18b   :  { %300 = vsyncmov [#allocation4] }
 0x18e   :  { %s301_s2 = vpop.sfrf %300 }
 0x18f   :  { %p381_p6 = scmp.ne.s32.totalorder %s301_s2, 0 }
 0x191   :  { %305 = shalt.err (%p381_p6)  }
 0x192   :  { %307 = vsyncmov [#allocation4 + $0x1] }
 0x195   :  { %s308_s12 = vpop.sfrf %307 }
 0x196   :  { %p382_p7 = scmp.ne.s32.totalorder %s308_s12, 0 }
 0x198   :  { %312 = shalt.err (%p382_p7)  }

</bundles_post_ra>
